<compile_context>
chip_gen: v7x
topology: tpu7x:2x2x1
jax: 0.10.0
libtpu: 0.0.40
codegen_flags: <defaults>
</compile_context>

<pallas_src>
import functools

import jax
import jax.numpy as jnp
import numpy as np
from jax.experimental import pallas as pl
from jax.experimental.pallas import tpu as pltpu


def _round_up(x, m):
    return ((x + m - 1) // m) * m


def _pick_tile(dim, unit, cap):
    """Largest multiple of `unit` that divides `dim` and is <= cap (>= unit)."""
    best = unit
    t = unit
    while t <= min(dim, cap):
        if dim % t == 0:
            best = t
        t += unit
    return best


# ------------------ shared tile body: out = A @ W + bias ------------------- #

def _matmul_bias_kernel(a_ref, w_ref, b_ref, o_ref):
    o_ref[...] = (jnp.dot(a_ref[...], w_ref[...],
                          preferred_element_type=jnp.float32)
                  + b_ref[...]).astype(o_ref.dtype)


# -------- Kernel A: hoisted input projection pre = x @ W_ih^T + b ---------- #

def _input_projection(x2d, w, b, *, tm_cap=256):
    M, E = x2d.shape
    N = w.shape[1]
    tm = _pick_tile(M, 8, tm_cap)
    return pl.pallas_call(
        _matmul_bias_kernel,
        out_shape=jax.ShapeDtypeStruct((M, N), jnp.float32),
        grid_spec=pltpu.PrefetchScalarGridSpec(
            num_scalar_prefetch=0,
            grid=(M // tm,),
            in_specs=[
                pl.BlockSpec((tm, E), lambda i: (i, 0)),   # x rows (streamed once)
                pl.BlockSpec((E, N), lambda i: (0, 0)),    # small W_ih^T, resident
                pl.BlockSpec((1, N), lambda i: (0, 0)),    # fused bias, resident
            ],
            out_specs=pl.BlockSpec((tm, N), lambda i: (i, 0)),
        ),
        compiler_params=pltpu.CompilerParams(
            dimension_semantics=("parallel",)),
    )(x2d, w, b)


# ------------- Kernel B: LSTM recurrence, one time step per grid ----------- #

def _lstm_step_kernel(pre_ref, whh_ref, hs_ref, h_sc, c_sc, *, hidden_pad):
    """pre_ref: (1, B_pad, 4*H_pad) precomputed x_t @ W_ih^T + (b_ih + b_hh)
       whh_ref: (H_pad, 4*H_pad)    per-gate-padded W_hh^T (resident across steps)
       hs_ref:  (1, B_pad, H_pad)   time-major bf16 output block for this step
       h_sc/c_sc: (B_pad, H_pad) f32 recurrent state persisting across the grid."""
    H = hidden_pad
    t = pl.program_id(0)

    @pl.when(t == 0)
    def _():
        h_sc[...] = jnp.zeros_like(h_sc)   # PyTorch default zero initial state
        c_sc[...] = jnp.zeros_like(c_sc)

    # Only the recurrent half of the matmul stays on the serial critical path.
    gates = pre_ref[0] + jnp.dot(h_sc[...], whh_ref[...],
                                 preferred_element_type=jnp.float32)

    # PyTorch LSTM gate order: input, forget, cell(g), output.
    # H_pad is a multiple of 128 -> each gate slice is a lane-aligned vreg view.
    # TODO(synk): for H < 128, pack the 4 gates into 4*H lanes and split with
    # lane masks (VPU) to avoid redundant EUP transcendentals on pad lanes.
    # TODO(synk): for large B_pad*H_pad, block this elementwise stage with
    # lax.fori_loop(unroll=True) to stay within the 64-vreg file.
    i_g = jax.nn.sigmoid(gates[:, 0 * H:1 * H])
    f_g = jax.nn.sigmoid(gates[:, 1 * H:2 * H])
    g_g = jnp.tanh(gates[:, 2 * H:3 * H])
    o_g = jax.nn.sigmoid(gates[:, 3 * H:4 * H])

    c_new = f_g * c_sc[...] + i_g * g_g
    h_new = o_g * jnp.tanh(c_new)
    c_sc[...] = c_new
    h_sc[...] = h_new

    # Time-major, full-(8,128)-tile unmasked store.
    hs_ref[0] = h_new.astype(hs_ref.dtype)


# --------- Kernel C: vocab projection, W_out streamed from HBM once -------- #

def _vocab_projection(hs2d, w, b, *, tm_cap=256, tv_cap=512):
    M, H_pad = hs2d.shape
    V_pad = w.shape[1]
    tm = _pick_tile(M, 8, tm_cap)
    tv = _pick_tile(V_pad, 128, tv_cap)
    # Vocab is the OUTER (megacore-sharded) axis: each W_out tile is fetched
    # exactly once; the much smaller hs is the tensor that gets re-streamed.
    return pl.pallas_call(
        _matmul_bias_kernel,
        out_shape=jax.ShapeDtypeStruct((M, V_pad), jnp.float32),
        grid_spec=pltpu.PrefetchScalarGridSpec(
            num_scalar_prefetch=0,
            grid=(V_pad // tv, M // tm),
            in_specs=[
                pl.BlockSpec((tm, H_pad), lambda j, i: (i, 0)),
                pl.BlockSpec((H_pad, tv), lambda j, i: (0, j)),
                pl.BlockSpec((1, tv), lambda j, i: (0, j)),
            ],
            out_specs=pl.BlockSpec((tm, tv), lambda j, i: (i, j)),
        ),
        compiler_params=pltpu.CompilerParams(
            dimension_semantics=("parallel", "arbitrary")),
    )(hs2d, w, b)


# ------------------------------ JAX wrapper -------------------------------- #

def decoder_rnn_forward(params, features, captions):
    """Pallas implementation of DecoderRNN.forward.

    features: f32 [B, E], captions: int32 [B, T_cap]  ->  logits f32 [B, T_cap, V]
    """
    embed_tbl = params["embed"]                       # (V, E)
    w_ih, w_hh = params["w_ih"], params["w_hh"]       # (4H, E), (4H, H)
    b_ih, b_hh = params["b_ih"], params["b_hh"]       # (4H,),   (4H,)
    w_out, b_out = params["w_out"], params["b_out"]   # (V, H),  (V,)

    H = w_hh.shape[1]
    V, E = embed_tbl.shape
    B = features.shape[0]
    T = captions.shape[1]                             # LSTM sees T steps

    B_pad = _round_up(B, 8)
    H_pad = _round_up(H, 128)
    V_pad = _round_up(V, 512) if V >= 512 else _round_up(V, 128)
    G = 4 * H_pad

    # --- glue: embedding gather + concat, built time-major (pad batch only) --
    # TODO(synk): fuse the embedding gather into the input-projection kernel
    # via scalar prefetch to avoid one HBM round trip of x.
    emb_tm = embed_tbl[captions[:, :-1].T]            # (T-1, B, E)
    x_tm = jnp.concatenate(
        [features[None, :, :].astype(jnp.float32), emb_tm.astype(jnp.float32)],
        axis=0)                                       # (T, B, E), time-major
    if B_pad != B:
        x_tm = jnp.pad(x_tm, ((0, 0), (0, B_pad - B), (0, 0)))

    # --- per-gate-padded recurrence weights (pad columns are exactly zero,
    #     so padded hidden/cell lanes stay 0 for all t) ------------------------
    w_ih_g = w_ih.reshape(4, H, E)
    w_hh_g = w_hh.reshape(4, H, H)
    b_g = (b_ih + b_hh).reshape(4, H)
    w_ih_pad = jnp.zeros((E, G), jnp.float32)
    w_hh_pad = jnp.zeros((H_pad, G), jnp.float32)
    b_pad = jnp.zeros((1, G), jnp.float32)
    for k in range(4):
        w_ih_pad = w_ih_pad.at[:, k * H_pad:k * H_pad + H].set(w_ih_g[k].T)
        w_hh_pad = w_hh_pad.at[:H, k * H_pad:k * H_pad + H].set(w_hh_g[k].T)
        b_pad = b_pad.at[0, k * H_pad:k * H_pad + H].set(b_g[k])

    # --- Kernel A: hoisted, fully parallel input projection ------------------
    pre2d = _input_projection(x_tm.reshape(T * B_pad, E), w_ih_pad, b_pad)
    pre = pre2d.reshape(T, B_pad, G)

    # --- Kernel B: serial recurrence, grid over T, streamed pre/hs ----------
    hs = pl.pallas_call(
        functools.partial(_lstm_step_kernel, hidden_pad=H_pad),
        out_shape=jax.ShapeDtypeStruct((T, B_pad, H_pad), jnp.bfloat16),
        grid_spec=pltpu.PrefetchScalarGridSpec(
            num_scalar_prefetch=0,
            grid=(T,),
            in_specs=[
                pl.BlockSpec((1, B_pad, G), lambda t: (t, 0, 0)),   # pre[t]
                pl.BlockSpec((H_pad, G), lambda t: (0, 0)),         # W_hh^T
            ],
            out_specs=pl.BlockSpec((1, B_pad, H_pad), lambda t: (t, 0, 0)),
            scratch_shapes=[
                pltpu.VMEM((B_pad, H_pad), jnp.float32),             # h state
                pltpu.VMEM((B_pad, H_pad), jnp.float32),             # c state
            ],
        ),
        compiler_params=pltpu.CompilerParams(
            dimension_semantics=("arbitrary",)),
    )(pre, w_hh_pad)

    # --- Kernel C: vocab projection (HBM-bound on W_out -> bf16 W and hs) ----
    w_out_pad = jnp.zeros((H_pad, V_pad), jnp.bfloat16).at[:H, :V].set(
        w_out.T.astype(jnp.bfloat16))
    b_out_pad = jnp.zeros((1, V_pad), jnp.float32).at[0, :V].set(b_out)
    logits2d = _vocab_projection(hs.reshape(T * B_pad, H_pad),
                                 w_out_pad, b_out_pad)

    # time-major -> batch-first; cheap tail op on the already-sliced logits.
    logits = logits2d.reshape(T, B_pad, V_pad)[:, :B, :V]
    return jnp.transpose(logits, (1, 0, 2))


# -------------------------- pure-JAX reference ----------------------------- #

def decoder_rnn_reference(params, features, captions):
    embed_tbl = params["embed"]
    w_ih, w_hh = params["w_ih"], params["w_hh"]
    b = params["b_ih"] + params["b_hh"]
    w_out, b_out = params["w_out"], params["b_out"]
    H = w_hh.shape[1]

    emb = embed_tbl[captions[:, :-1]]
    x = jnp.concatenate([features[:, None, :], emb], 1)   # (B, T, E)
    B = x.shape[0]

    def step(carry, x_t):
        h, c = carry
        gates = x_t @ w_ih.T + h @ w_hh.T + b
        i_g = jax.nn.sigmoid(gates[:, 0 * H:1 * H])
        f_g = jax.nn.sigmoid(gates[:, 1 * H:2 * H])
        g_g = jnp.tanh(gates[:, 2 * H:3 * H])
        o_g = jax.nn.sigmoid(gates[:, 3 * H:4 * H])
        c = f_g * c + i_g * g_g
        h = o_g * jnp.tanh(c)
        return (h, c), h

    h0 = jnp.zeros((B, H), jnp.float32)
    (_, _), hs = jax.lax.scan(step, (h0, h0), jnp.transpose(x, (1, 0, 2)))
    hs = jnp.transpose(hs, (1, 0, 2))                     # (B, T, H)
    return hs @ w_out.T + b_out


# --------------------------------- main ------------------------------------ #

if __name__ == "__main__":
    B = 2            # batch
    T_CAP = 8        # caption length (tokens); LSTM sees T = T_CAP steps
    EMBED = 32       # embed_size
    HIDDEN = 32      # hidden_size
    VOCAB = 64       # vocab_size

    key = jax.random.PRNGKey(0)
    keys = jax.random.split(key, 9)
    s = 0.1
    params = {
        "embed": s * jax.random.normal(keys[0], (VOCAB, EMBED), jnp.float32),
        "w_ih":  s * jax.random.normal(keys[1], (4 * HIDDEN, EMBED), jnp.float32),
        "w_hh":  s * jax.random.normal(keys[2], (4 * HIDDEN, HIDDEN), jnp.float32),
        "b_ih":  s * jax.random.normal(keys[3], (4 * HIDDEN,), jnp.float32),
        "b_hh":  s * jax.random.normal(keys[4], (4 * HIDDEN,), jnp.float32),
        "w_out": s * jax.random.normal(keys[5], (VOCAB, HIDDEN), jnp.float32),
        "b_out": s * jax.random.normal(keys[6], (VOCAB,), jnp.float32),
    }
    features = jax.random.normal(keys[7], (B, EMBED), jnp.float32)
    captions = jax.random.randint(keys[8], (B, T_CAP), 0, VOCAB, jnp.int32)

    out = decoder_rnn_forward(params, features, captions)
    out = jax.block_until_ready(out)
    assert out.shape == (B, T_CAP, VOCAB), out.shape

    ref = jax.block_until_ready(decoder_rnn_reference(params, features, captions))
    # bf16 hs / W_out in the projection (f32 accumulation) -> relaxed tolerance.
    np.testing.assert_allclose(np.asarray(out), np.asarray(ref),
                               rtol=2e-2, atol=2e-2)

    print("KERNEL_OK")
</pallas_src>

<mosaic_0001>
module attributes {stable_mosaic.version = 11 : i64} {
  func.func @_matmul_bias_kernel(%arg0: i32, %arg1: memref<64x32xf32, #tpu.memory_space<vmem>>, %arg2: memref<32x512xf32, #tpu.memory_space<vmem>>, %arg3: memref<1x512xf32, #tpu.memory_space<vmem>>, %arg4: memref<64x512xf32, #tpu.memory_space<vmem>>) attributes {dimension_semantics = [#tpu.dimension_semantics<parallel>], iteration_bounds = array<i64: 1>, scalar_prefetch = 0 : i64, scratch_operands = 0 : i64, tpu.core_type = #tpu.core_type<tc>, window_params = [{transform_indices = @transform_0, window_bounds = array<i64: 64, 32>}, {pipeline_mode = #tpu.pipeline_mode<synchronous>, transform_indices = @transform_1, window_bounds = array<i64: 32, 512>}, {pipeline_mode = #tpu.pipeline_mode<synchronous>, transform_indices = @transform_2, window_bounds = array<i64: 1, 512>}, {transform_indices = @transform_3, window_bounds = array<i64: 64, 512>}]} {
    %c0 = arith.constant 0 : index
    %c0_0 = arith.constant 0 : index
    %0 = vector.load %arg1[%c0, %c0_0] : memref<64x32xf32, #tpu.memory_space<vmem>>, vector<64x32xf32>
    %c0_1 = arith.constant 0 : index
    %c0_2 = arith.constant 0 : index
    %1 = vector.load %arg2[%c0_1, %c0_2] : memref<32x512xf32, #tpu.memory_space<vmem>>, vector<32x512xf32>
    %cst = arith.constant dense<0.000000e+00> : vector<64x512xf32>
    %2 = tpu.matmul %0, %1, %cst {dimension_numbers = #tpu.dot_dimension_numbers<[1], [0], [0], [1], [0, 0, 1, 1], [], []>} : vector<64x32xf32>, vector<32x512xf32>, vector<64x512xf32> -> vector<64x512xf32>
    %c0_3 = arith.constant 0 : index
    %c0_4 = arith.constant 0 : index
    %3 = vector.load %arg3[%c0_3, %c0_4] : memref<1x512xf32, #tpu.memory_space<vmem>>, vector<1x512xf32>
    %4 = vector.broadcast %3 : vector<1x512xf32> to vector<64x512xf32>
    %5 = arith.addf %2, %4 : vector<64x512xf32>
    %c0_5 = arith.constant 0 : index
    %c0_6 = arith.constant 0 : index
    %6 = vector.load %arg4[%c0_5, %c0_6] : memref<64x512xf32, #tpu.memory_space<vmem>>, vector<64x512xf32>
    tpu.vector_store %arg4[%c0_5, %c0_6], %5 {strides = array<i32>} : memref<64x512xf32, #tpu.memory_space<vmem>>, vector<64x512xf32>,
    return
  }
  func.func @transform_0(%arg0: i32) -> (i32, i32) {
    %c0_i32 = arith.constant 0 : i32
    %c0_i32_0 = arith.constant 0 : i32
    return %arg0, %c0_i32 : i32, i32
  }
  func.func @transform_1(%arg0: i32) -> (i32, i32) {
    %c0_i32 = arith.constant 0 : i32
    %c0_i32_0 = arith.constant 0 : i32
    %c0_i32_1 = arith.constant 0 : i32
    return %c0_i32, %c0_i32_0 : i32, i32
  }
  func.func @transform_2(%arg0: i32) -> (i32, i32) {
    %c0_i32 = arith.constant 0 : i32
    %c0_i32_0 = arith.constant 0 : i32
    %c0_i32_1 = arith.constant 0 : i32
    return %c0_i32, %c0_i32_0 : i32, i32
  }
  func.func @transform_3(%arg0: i32) -> (i32, i32) {
    %c0_i32 = arith.constant 0 : i32
    %c0_i32_0 = arith.constant 0 : i32
    return %arg0, %c0_i32 : i32, i32
  }
}

</mosaic_0001>

<bundles_post_ra>
// kernel: tpu_custom_call.1
= control target key start
LH: loop header
LB: loop body
LE: loop exit
PB: predicated region body
PF: predicated region fallthrough
CT: control target
= control target key end

     0   :  { %8 = vsyncpa [#allocation3], 0  ;;  %s614_s0 = inlined_call_operand.vmem [shape: f32[64,32], index: 0, kind: input, shape index: {}]   ;;  %s615_s1 = inlined_call_operand.hbm [shape: f32[32,512], index: 1, kind: input, shape index: {}]   ;;  %s616_s2 = inlined_call_operand.vmem [shape: f32[1,512], index: 2, kind: input, shape index: {}]   ;;  %s617_s3 = inlined_call_operand.hbm [shape: f32[64,512], index: 3, kind: output, shape index: {}]  }
   0x1   :  { %9 = vsyncpa [#allocation4], 0  ;;  %s460_s12 = smov [#allocation2]   ;;  %s412_s16 = scalar_lea.hbm %s615_s1, 2048 }
   0x2   :  { %s17_s13 = sshll.u32 %s460_s12, 4  ;;  %p413_p0 = scmp.ne.s32.totalorder %s615_s1, %s412_s16  ;;  %s18_s13 = int_to_ptr.vmem [resolvable:$true] %s17_s13 }
   0x3   :  { %p416_p1 = scmp.lt.u32.totalorder %s412_s16, %s615_s1 }
   0x5   :  { %p418_p2 = pnand %p416_p1, %p413_p0 }
   0x7   :  { %421 = shalt.err (!%p418_p2)
}
   0x8   :  { %s422_s21 = scalar_lea.vmem %s18_s13, 2048  ;;  %p427_p4 = scmp.lt.s32.totalorder %s18_s13, %s18_s13 }
   0x9   :  { %p423_p3 = scmp.ne.s32.totalorder %s18_s13, %s422_s21  ;;  %p428_p5 = scmp.lt.s32.totalorder %s422_s21, %s422_s21 }
   0xb   :  { %p429_p6 = por %p428_p5, %p427_p4 }
   0xd   :  { %p430_p7 = pnand %p429_p6, %p423_p3 }
   0xf   :  { %433 = shalt.err (!%p430_p7)
}
  0x10   :  { %s461_s22 = smov 512   ;;  %s462_s23 = smov 32  }
  0x11   :  { %23 = dma.hbm_to_vmem [thread:$0]  %s615_s1, 2048, %s18_s13, [#allocation3], %s461_s22, %s461_s22, %s462_s23  }
  0x12   :  { %456 = dma.done.wait [#allocation3], 2048  }
  0x13   :  { %457 = vsyncadd [#allocation3], 4294965248  ;;  %v463_v0 = vmov 0.0   ;;  %v38_v1 = vld [vmem:[#allocation2 + $0x8] sm:$0xff]  ;;  %v40_v3 = vld [vmem:[#allocation2 + $0x18] sm:$0xff]  ;;  %vm75_vm0 = vcmask 261120   ;;  %v55_v33 = vlaneseq }
  0x14   :  { %164 = vmatprep.mubr.f32.mxu0 %v463_v0  ;;  %277 = vmatprep.mubr.f32.mxu1 %v463_v0  ;;  %v42_v2 = vld [vmem:[#allocation2 + $0x28] sm:$0xff]  ;;  %v44_v5 = vld [vmem:[#allocation2 + $0x38] sm:$0xff]  ;;  %v37_v6 = vld [vmem:[#allocation2] sm:$0xff] }
  0x15   :  { %v391_v4 = vpack.c.bf16 %v42_v2, %v38_v1  ;;  %v41_v7 = vld [vmem:[#allocation2 + $0x20] sm:$0xff]  ;;  %v399_v8 = vpack.c.bf16 %v44_v5, %v40_v3  ;;  %v39_v10 = vld [vmem:[#allocation2 + $0x10] sm:$0xff]  ;;  %v46_v12 = vld [vmem:[#allocation2 + $0x48] sm:$0xff]  ;;  %v56_v34 = vshrl.u32 %v55_v33, 7 }
  0x16   :  { %v393_v9 = vpack.c.bf16 %v41_v7, %v37_v6  ;;  %v43_v11 = vld [vmem:[#allocation2 + $0x30] sm:$0xff]  ;;  %v50_v14 = vld [vmem:[#allocation2 + $0x68] sm:$0xff]  ;;  %v48_v15 = vld [vmem:[#allocation2 + $0x58] sm:$0xff] }
  0x17   :  { %392 = vmatprep.subr.bf16.mxu0 %v391_v4  ;;  %v401_v13 = vpack.c.bf16 %v43_v11, %v39_v10  ;;  %v52_v16 = vld [vmem:[#allocation2 + $0x78] sm:$0xff]  ;;  %400 = vmatprep.subr.bf16.mxu1 %v399_v8  ;;  %v395_v17 = vpack.c.bf16 %v50_v14, %v46_v12  ;;  %v45_v19 = vld [vmem:[#allocation2 + $0x40] sm:$0xff]  ;;  %v47_v21 = vld [vmem:[#allocation2 + $0x50] sm:$0xff]  ;;  %v57_v35 = vsub.s32 0, %v56_v34  ;;  %v65_v37 = vsub.s32 2, %v56_v34 }
  0x18   :  { %394 = vmatpush1.bf16.msra.mxu0 %v393_v9  ;;  %v403_v18 = vpack.c.bf16 %v52_v16, %v48_v15  ;;  %v49_v20 = vld [vmem:[#allocation2 + $0x60] sm:$0xff]  ;;  %v51_v23 = vld [vmem:[#allocation2 + $0x70] sm:$0xff]  ;;  %v30_v26 = vld [vmem:[%s614_s0 + $0x8] sm:$0xff]  ;;  %v61_v38 = vsub.s32 1, %v56_v34  ;;  %v69_v39 = vsub.s32 3, %v56_v34 }
  0x19   :  { %402 = vmatpush1.bf16.msra.mxu1 %v401_v13  ;;  %v397_v22 = vpack.c.bf16 %v49_v20, %v45_v19  ;;  %396 = vmatprep.subr.bf16.mxu0 %v395_v17  ;;  %v405_v24 = vpack.c.bf16 %v51_v23, %v47_v21  ;;  %v29_v25 = vld [vmem:[%s614_s0] sm:$0xff]  ;;  %v31_v27 = vld [vmem:[%s614_s0 + $0x10] sm:$0xff]  ;;  %v32_v28 = vld [vmem:[%s614_s0 + $0x18] sm:$0xff] }
  0x1a   :  { %404 = vmatprep.subr.bf16.mxu1 %v403_v18  ;;  %v33_v29 = vld [vmem:[%s614_s0 + $0x20] sm:$0xff]  ;;  %v34_v30 = vld [vmem:[%s614_s0 + $0x28] sm:$0xff]  ;;  %v35_v31 = vld [vmem:[%s614_s0 + $0x30] sm:$0xff] }
  0x1b   :  { %v36_v32 = vld [vmem:[%s614_s0 + $0x38] sm:$0xff]  ;;  %v53_v36 = vld [vmem:[%s616_s2] sm:$0xf]  ;;  %s464_s0 = smov [#allocation5]  }
  0x1c   :  { %398 = vmatpush1.bf16.msra.mxu0 %v397_v22  ;;  %v559_v40 = vrot.slane %v53_v36, %v57_v35  ;;  %v561_v41 = vrot.slane %v53_v36, %v65_v37  ;;  %v563_v42 = vrot.slane %v53_v36, %v61_v38  ;;  %v565_v43 = vrot.slane %v53_v36, %v69_v39  ;;  %s363_s2 = sshll.u32 %s464_s0, 4  ;;  %s364_s2 = int_to_ptr.vmem [resolvable:$true] %s363_s2 }
  0x1d   :  { %406 = vmatpush1.bf16.msra.mxu1 %v405_v24  ;;  %s434_s16 = scalar_lea.vmem %s364_s2, 4096  ;;  %p439_p9 = scmp.lt.s32.totalorder %s364_s2, %s364_s2 }
  0x1e   :  { %p435_p8 = scmp.ne.s32.totalorder %s364_s2, %s434_s16  ;;  %p440_p10 = scmp.lt.s32.totalorder %s434_s16, %s434_s16 }
  0x1f   :  { %375 = vmatmul.mubr.msk.f32.vlgmr.msra.gmra.mrb[0].mxu0 %vm75_vm0, %v29_v25 }
  0x20   :  { %383 = vmatmul.mubr.msk.f32.vlgmr.msra.gmra.mrb[0].mxu1 %vm75_vm0, %v29_v25  ;;  %170 = vmatprep.mubr.f32.mxu0 %v463_v0  ;;  %p441_p11 = por %p440_p10, %p439_p9 }
  0x21   :  { %283 = vmatprep.mubr.f32.mxu1 %v463_v0 }
  0x22   :  { %p442_p12 = pnand %p441_p11, %p435_p8 }
  0x23   :  { %376 = vmatmul.mubr.msk.f32.gmra.mrb[2].mxu0 %vm75_vm0, %v30_v26 }
  0x24   :  { %384 = vmatmul.mubr.msk.f32.gmra.mrb[2].mxu1 %vm75_vm0, %v30_v26  ;;  %176 = vmatprep.mubr.f32.mxu0 %v463_v0 }
  0x25   :  { %289 = vmatprep.mubr.f32.mxu1 %v463_v0 }
  0x27   :  { %377 = vmatmul.mubr.msk.f32.gmra.mrb[4].mxu0 %vm75_vm0, %v31_v27 }
  0x28   :  { %385 = vmatmul.mubr.msk.f32.gmra.mrb[4].mxu1 %vm75_vm0, %v31_v27  ;;  %182 = vmatprep.mubr.f32.mxu0 %v463_v0 }
  0x29   :  { %295 = vmatprep.mubr.f32.mxu1 %v463_v0 }
  0x2b   :  { %378 = vmatmul.mubr.msk.f32.gmra.mrb[6].mxu0 %vm75_vm0, %v32_v28 }
  0x2c   :  { %386 = vmatmul.mubr.msk.f32.gmra.mrb[6].mxu1 %vm75_vm0, %v32_v28  ;;  %188 = vmatprep.mubr.f32.mxu0 %v463_v0 }
  0x2d   :  { %301 = vmatprep.mubr.f32.mxu1 %v463_v0 }
  0x2f   :  { %379 = vmatmul.mubr.msk.f32.gmra.mrb[8].mxu0 %vm75_vm0, %v33_v29 }
  0x30   :  { %387 = vmatmul.mubr.msk.f32.gmra.mrb[8].mxu1 %vm75_vm0, %v33_v29  ;;  %194 = vmatprep.mubr.f32.mxu0 %v463_v0 }
  0x31   :  { %307 = vmatprep.mubr.f32.mxu1 %v463_v0 }
  0x33   :  { %380 = vmatmul.mubr.msk.f32.gmra.mrb[10].mxu0 %vm75_vm0, %v34_v30 }
  0x34   :  { %388 = vmatmul.mubr.msk.f32.gmra.mrb[10].mxu1 %vm75_vm0, %v34_v30  ;;  %200 = vmatprep.mubr.f32.mxu0 %v463_v0 }
  0x35   :  { %313 = vmatprep.mubr.f32.mxu1 %v463_v0 }
  0x37   :  { %381 = vmatmul.mubr.msk.f32.gmra.mrb[12].mxu0 %vm75_vm0, %v35_v31 }
  0x38   :  { %389 = vmatmul.mubr.msk.f32.gmra.mrb[12].mxu1 %vm75_vm0, %v35_v31  ;;  %206 = vmatprep.mubr.f32.mxu0 %v463_v0 }
  0x39   :  { %319 = vmatprep.mubr.f32.mxu1 %v463_v0 }
  0x3b   :  { %382 = vmatmul.mubr.msk.f32.gmra.mrb[14].mxu0 %vm75_vm0, %v36_v32 }
  0x3c   :  { %390 = vmatmul.mubr.msk.f32.gmra.mrb[14].mxu1 %vm75_vm0, %v36_v32 }
  0xf2   :  { %v166_v44 = vpop.f32.mrb[0].mxu0 }
  0xf3   :  { %v167_v45 = vadd.f32 %v166_v44, %v559_v40  ;;  %v279_v46 = vpop.f32.mrb[0].mxu1  ;;  %v168_v47 = vpop.f32.mrb[1].mxu0 }
  0xf4   :  { %v280_v48 = vadd.f32 %v279_v46, %v561_v41  ;;  %v169_v49 = vadd.f32 %v168_v47, %v563_v42  ;;  %v281_v50 = vpop.f32.mrb[1].mxu1 }
  0xf5   :  { %326 = vst [vmem:[#allocation5] sm:$0xff] %v167_v45  ;;  %v282_v51 = vadd.f32 %v281_v50, %v565_v43 }
  0xf6   :  { %328 = vst [vmem:[#allocation5 + $0x10] sm:$0xff] %v280_v48  ;;  %327 = vst [vmem:[#allocation5 + $0x8] sm:$0xff] %v169_v49  ;;  %v172_v52 = vpop.f32.mrb[2].mxu0 }
  0xf7   :  { %329 = vst [vmem:[#allocation5 + $0x18] sm:$0xff] %v282_v51  ;;  %v173_v53 = vadd.f32 %v172_v52, %v559_v40  ;;  %v285_v54 = vpop.f32.mrb[2].mxu1  ;;  %v174_v55 = vpop.f32.mrb[3].mxu0 }
  0xf8   :  { %v286_v56 = vadd.f32 %v285_v54, %v561_v41  ;;  %v175_v57 = vadd.f32 %v174_v55, %v563_v42  ;;  %v287_v58 = vpop.f32.mrb[3].mxu1 }
  0xf9   :  { %330 = vst [vmem:[#allocation5 + $0x20] sm:$0xff] %v173_v53  ;;  %v288_v59 = vadd.f32 %v287_v58, %v565_v43 }
  0xfa   :  { %332 = vst [vmem:[#allocation5 + $0x30] sm:$0xff] %v286_v56  ;;  %331 = vst [vmem:[#allocation5 + $0x28] sm:$0xff] %v175_v57  ;;  %v178_v60 = vpop.f32.mrb[4].mxu0 }
  0xfb   :  { %333 = vst [vmem:[#allocation5 + $0x38] sm:$0xff] %v288_v59  ;;  %v179_v61 = vadd.f32 %v178_v60, %v559_v40  ;;  %v291_v62 = vpop.f32.mrb[4].mxu1  ;;  %v180_v63 = vpop.f32.mrb[5].mxu0 }
  0xfc   :  { %v292_v0 = vadd.f32 %v291_v62, %v561_v41  ;;  %v181_v1 = vadd.f32 %v180_v63, %v563_v42  ;;  %v293_v2 = vpop.f32.mrb[5].mxu1 }
  0xfd   :  { %334 = vst [vmem:[#allocation5 + $0x40] sm:$0xff] %v179_v61  ;;  %v294_v3 = vadd.f32 %v293_v2, %v565_v43 }
  0xfe   :  { %336 = vst [vmem:[#allocation5 + $0x50] sm:$0xff] %v292_v0  ;;  %335 = vst [vmem:[#allocation5 + $0x48] sm:$0xff] %v181_v1  ;;  %v184_v4 = vpop.f32.mrb[6].mxu0 }
  0xff   :  { %337 = vst [vmem:[#allocation5 + $0x58] sm:$0xff] %v294_v3  ;;  %v185_v5 = vadd.f32 %v184_v4, %v559_v40  ;;  %v297_v6 = vpop.f32.mrb[6].mxu1  ;;  %v186_v7 = vpop.f32.mrb[7].mxu0 }
 0x100   :  { %v298_v8 = vadd.f32 %v297_v6, %v561_v41  ;;  %v187_v9 = vadd.f32 %v186_v7, %v563_v42  ;;  %v299_v10 = vpop.f32.mrb[7].mxu1 }
 0x101   :  { %338 = vst [vmem:[#allocation5 + $0x60] sm:$0xff] %v185_v5  ;;  %v300_v11 = vadd.f32 %v299_v10, %v565_v43 }
 0x102   :  { %340 = vst [vmem:[#allocation5 + $0x70] sm:$0xff] %v298_v8  ;;  %339 = vst [vmem:[#allocation5 + $0x68] sm:$0xff] %v187_v9  ;;  %v190_v12 = vpop.f32.mrb[8].mxu0 }
 0x103   :  { %341 = vst [vmem:[#allocation5 + $0x78] sm:$0xff] %v300_v11  ;;  %v191_v13 = vadd.f32 %v190_v12, %v559_v40  ;;  %v303_v14 = vpop.f32.mrb[8].mxu1  ;;  %v192_v15 = vpop.f32.mrb[9].mxu0 }
 0x104   :  { %v304_v16 = vadd.f32 %v303_v14, %v561_v41  ;;  %v193_v17 = vadd.f32 %v192_v15, %v563_v42  ;;  %v305_v18 = vpop.f32.mrb[9].mxu1 }
 0x105   :  { %342 = vst [vmem:[#allocation5 + $0x80] sm:$0xff] %v191_v13  ;;  %v306_v19 = vadd.f32 %v305_v18, %v565_v43 }
 0x106   :  { %344 = vst [vmem:[#allocation5 + $0x90] sm:$0xff] %v304_v16  ;;  %343 = vst [vmem:[#allocation5 + $0x88] sm:$0xff] %v193_v17  ;;  %v196_v20 = vpop.f32.mrb[10].mxu0 }
 0x107   :  { %345 = vst [vmem:[#allocation5 + $0x98] sm:$0xff] %v306_v19  ;;  %v197_v21 = vadd.f32 %v196_v20, %v559_v40  ;;  %v309_v22 = vpop.f32.mrb[10].mxu1  ;;  %v198_v23 = vpop.f32.mrb[11].mxu0 }
 0x108   :  { %v310_v24 = vadd.f32 %v309_v22, %v561_v41  ;;  %v199_v25 = vadd.f32 %v198_v23, %v563_v42  ;;  %v311_v26 = vpop.f32.mrb[11].mxu1 }
 0x109   :  { %346 = vst [vmem:[#allocation5 + $0xa0] sm:$0xff] %v197_v21  ;;  %v312_v27 = vadd.f32 %v311_v26, %v565_v43 }
 0x10a   :  { %348 = vst [vmem:[#allocation5 + $0xb0] sm:$0xff] %v310_v24  ;;  %347 = vst [vmem:[#allocation5 + $0xa8] sm:$0xff] %v199_v25  ;;  %v202_v28 = vpop.f32.mrb[12].mxu0 }
 0x10b   :  { %349 = vst [vmem:[#allocation5 + $0xb8] sm:$0xff] %v312_v27  ;;  %v203_v29 = vadd.f32 %v202_v28, %v559_v40  ;;  %v315_v30 = vpop.f32.mrb[12].mxu1  ;;  %v204_v31 = vpop.f32.mrb[13].mxu0 }
 0x10c   :  { %v316_v32 = vadd.f32 %v315_v30, %v561_v41  ;;  %v205_v33 = vadd.f32 %v204_v31, %v563_v42  ;;  %v317_v34 = vpop.f32.mrb[13].mxu1 }
 0x10d   :  { %350 = vst [vmem:[#allocation5 + $0xc0] sm:$0xff] %v203_v29  ;;  %v318_v35 = vadd.f32 %v317_v34, %v565_v43 }
 0x10e   :  { %352 = vst [vmem:[#allocation5 + $0xd0] sm:$0xff] %v316_v32  ;;  %351 = vst [vmem:[#allocation5 + $0xc8] sm:$0xff] %v205_v33  ;;  %v208_v36 = vpop.f32.mrb[14].mxu0 }
 0x10f   :  { %353 = vst [vmem:[#allocation5 + $0xd8] sm:$0xff] %v318_v35  ;;  %v209_v37 = vadd.f32 %v208_v36, %v559_v40  ;;  %v321_v38 = vpop.f32.mrb[14].mxu1  ;;  %v210_v39 = vpop.f32.mrb[15].mxu0 }
 0x110   :  { %v322_v44 = vadd.f32 %v321_v38, %v561_v41  ;;  %v211_v45 = vadd.f32 %v210_v39, %v563_v42  ;;  %v323_v46 = vpop.f32.mrb[15].mxu1 }
 0x111   :  { %354 = vst [vmem:[#allocation5 + $0xe0] sm:$0xff] %v209_v37  ;;  %v324_v47 = vadd.f32 %v323_v46, %v565_v43 }
 0x112   :  { %356 = vst [vmem:[#allocation5 + $0xf0] sm:$0xff] %v322_v44  ;;  %355 = vst [vmem:[#allocation5 + $0xe8] sm:$0xff] %v211_v45 }
 0x113   :  { %357 = vst [vmem:[#allocation5 + $0xf8] sm:$0xff] %v324_v47 }
 0x114   :  { %445 = shalt.err (!%p442_p12)
}
 0x115   :  { %s446_s19 = scalar_lea.hbm %s617_s3, 4096 }
 0x116   :  { %p447_p13 = scmp.ne.s32.totalorder %s617_s3, %s446_s19  ;;  %p450_p0 = scmp.lt.u32.totalorder %s446_s19, %s617_s3 }
 0x118   :  { %p452_p1 = pnand %p450_p0, %p447_p13 }
 0x11a   :  { %455 = shalt.err (!%p452_p1)
}
 0x11b   :  { %369 = dma.vmem_to_hbm [thread:$0]  %s364_s2, 4096, %s617_s3, [#allocation4], %s461_s22, %s461_s22, %s462_s23  }
 0x11c   :  { %458 = dma.done.wait [#allocation4], 4096  }
 0x11d   :  { %459 = vsyncadd [#allocation4], 4294963200 }
 0x11e   :  { %373 = vsyncpa [#allocation3], 1 }
 0x11f   :  { %374 = vsyncpa [#allocation4], 1 }

</bundles_post_ra>
